<compile_context>
chip_gen: v5e
topology: v5e:2x2
jax: 0.10.0
libtpu: 0.0.40
codegen_flags: <defaults>
</compile_context>

<pallas_src>
import functools

import jax
import jax.numpy as jnp
from jax import lax
from jax.experimental import pallas as pl
from jax.experimental.pallas import tpu as pltpu


def _channel_attention_kernel(x_ref, w1_ref, b1_ref, w2_ref, b2_ref,
                              out_ref, scale_ref, *, hw_true):
    # x_ref: (GB, C, HWp) lane-dense tile for a group of GB batch elements.
    x = x_ref[...]                                  # native dtype, no f32 copy
    GB, C, HWp = x.shape

    w1 = w1_ref[...].astype(jnp.float32)            # (C, Cr)
    b1 = b1_ref[...].astype(jnp.float32)            # (1, Cr)
    w2 = w2_ref[...].astype(jnp.float32)            # (Cr, C)
    b2 = b2_ref[...].astype(jnp.float32)            # (1, C)

    # Global avg / max pooling over the spatial (lane) axis, f32 accumulation.
    avg_p = jnp.sum(x, axis=2, dtype=jnp.float32) * (1.0 / hw_true)   # (GB, C)
    if HWp != hw_true:
        # Spatial axis was zero-padded in the wrapper: mask the pad for max.
        lane = lax.broadcasted_iota(jnp.int32, (GB, C, HWp), 2)
        xm = jnp.where(lane < hw_true, x.astype(jnp.float32), -jnp.inf)
        max_p = jnp.max(xm, axis=2)                                   # (GB, C)
    else:
        max_p = jnp.max(x, axis=2).astype(jnp.float32)                # (GB, C)

    # Stack avg/max vectors of all GB elements -> one shared-MLP evaluation
    # per grid step (single pair of small dots on the MXU).
    p = jnp.concatenate([avg_p, max_p], axis=0)                       # (2GB, C)
    h = jnp.dot(p, w1, preferred_element_type=jnp.float32) + b1       # (2GB, Cr)
    h = jnp.maximum(h, 0.0)
    o = jnp.dot(h, w2, preferred_element_type=jnp.float32)            # (2GB, C)

    # shared_mlp(avg) + shared_mlp(max): b2 is added once per MLP call -> 2*b2.
    logits = o[:GB, :] + o[GB:, :] + 2.0 * b2                         # (GB, C)
    scale = jax.nn.sigmoid(logits)                                    # (GB, C)

    # Native-dtype multiply; broadcast of the per-channel scale along lanes.
    out_ref[...] = x * scale.astype(x.dtype)[:, :, None]              # (GB,C,HWp)
    scale_ref[...] = scale.astype(scale_ref.dtype)                    # (GB, C)


def _choose_batch_group(B, C, HWp, itemsize, target_bytes):
    """Largest GB dividing B with GB*C*HWp*itemsize <= target, keeping >=2
    grid steps whenever B >= 2 (so both TensorCores on 2-TC chips get work)."""
    per_elem = C * HWp * itemsize
    best = 1
    for gb in range(1, B + 1):
        if B % gb != 0:
            continue
        steps = B // gb
        if B >= 2 and steps < 2:
            continue
        if gb * per_elem <= target_bytes:
            best = gb
    return best


def channel_attention(x, w1, b1, w2, b2, *, target_tile_bytes=2 << 20):
    """x: (B, C, H, W); w1: (C, Cr); b1: (Cr,); w2: (Cr, C); b2: (C,).

    Returns (x * scale, scale_expanded) exactly like the PyTorch module.
    Weights are right-multiplication matrices (torch nn.Linear weight, transposed).
    """
    B, C, H, W = x.shape
    Cr = w1.shape[1]
    HW = H * W
    # Pad the spatial axis to a lane multiple (unmasked full-lane vst, clean DMAs).
    HWp = ((HW + 127) // 128) * 128

    x_flat = x.reshape(B, C, HW)
    if HWp != HW:
        x_flat = jnp.pad(x_flat, ((0, 0), (0, 0), (0, HWp - HW)))

    GB = _choose_batch_group(B, C, HWp, x.dtype.itemsize, target_tile_bytes)
    steps = B // GB

    kernel = functools.partial(_channel_attention_kernel, hw_true=HW)

    grid_spec = pltpu.PrefetchScalarGridSpec(
        num_scalar_prefetch=0,
        grid=(steps,),
        in_specs=[
            pl.BlockSpec((GB, C, HWp), lambda b: (b, 0, 0)),   # x group tile
            pl.BlockSpec((C, Cr), lambda b: (0, 0)),
            pl.BlockSpec((1, Cr), lambda b: (0, 0)),
            pl.BlockSpec((Cr, C), lambda b: (0, 0)),
            pl.BlockSpec((1, C), lambda b: (0, 0)),
        ],
        out_specs=[
            pl.BlockSpec((GB, C, HWp), lambda b: (b, 0, 0)),   # x * scale
            pl.BlockSpec((None, GB, C), lambda b: (b, 0, 0)),  # lane-dense scales
        ],
    )

    out_shapes = (
        jax.ShapeDtypeStruct((B, C, HWp), x.dtype),
        jax.ShapeDtypeStruct((steps, GB, C), x.dtype),
    )

    # Default scoped-VMEM limits are sufficient for <=2 MiB tiles (double-
    # buffered in+out stays well under the 32 MiB scoped default on all gens).
    out_flat, scale_grp = pl.pallas_call(
        kernel,
        out_shape=out_shapes,
        grid_spec=grid_spec,
        compiler_params=pltpu.CompilerParams(
            dimension_semantics=("parallel",)),
    )(x_flat, w1, b1.reshape(1, Cr), w2, b2.reshape(1, C))

    out = out_flat[:, :, :HW].reshape(B, C, H, W)
    scale = scale_grp.reshape(B, C)
    # Broadcast at the consumer (matches the module's `.expand_as(x)`); XLA
    # fuses/DCEs this if only `out` is used downstream.
    scale_full = jnp.broadcast_to(scale[:, :, None, None], (B, C, H, W))
    return out, scale_full


def channel_attention_ref(x, w1, b1, w2, b2):
    """Pure-JAX reference mirroring the PyTorch forward."""
    avg_p = jnp.mean(x, axis=(2, 3))                    # (B, C)
    max_p = jnp.max(x, axis=(2, 3))                     # (B, C)

    def mlp(p):
        h = jnp.maximum(p @ w1 + b1, 0.0)
        return h @ w2 + b2

    scale = jax.nn.sigmoid(mlp(avg_p) + mlp(max_p))     # (B, C)
    scale_e = jnp.broadcast_to(scale[:, :, None, None], x.shape)
    return x * scale_e, scale_e


def _run_case(key, B, C, Cr, H, W):
    kx, k1, k2, k3, k4 = jax.random.split(key, 5)
    x = jax.random.normal(kx, (B, C, H, W), dtype=jnp.float32)
    w1 = jax.random.normal(k1, (C, Cr), dtype=jnp.float32) * 0.1
    b1 = jax.random.normal(k2, (Cr,), dtype=jnp.float32) * 0.1
    w2 = jax.random.normal(k3, (Cr, C), dtype=jnp.float32) * 0.1
    b2 = jax.random.normal(k4, (C,), dtype=jnp.float32) * 0.1

    out, scale = channel_attention(x, w1, b1, w2, b2)
    out, scale = jax.block_until_ready((out, scale))

    out_ref, scale_ref = channel_attention_ref(x, w1, b1, w2, b2)
    assert out.shape == (B, C, H, W) and scale.shape == (B, C, H, W)
    assert jnp.allclose(out, out_ref, atol=1e-5, rtol=1e-5)
    assert jnp.allclose(scale, scale_ref, atol=1e-5, rtol=1e-5)


if __name__ == "__main__":
    # Module config: map_channel=32, reduction_ratio=16 -> hidden = 2.
    key = jax.random.PRNGKey(0)
    k_a, k_b = jax.random.split(key)

    # Primary case: B=2, C=32, 16x16 (HW already lane-aligned; GB=1, 2 steps).
    _run_case(k_a, B=2, C=32, Cr=2, H=16, W=16)

    # Secondary case: exercises batch grouping (GB=2) and HW padding (14x14 -> 196).
    _run_case(k_b, B=4, C=32, Cr=2, H=14, W=14)

    print("KERNEL_OK")
</pallas_src>

<mosaic_0001>
module attributes {stable_mosaic.version = 11 : i64} {
  func.func @_channel_attention_kernel(%arg0: i32, %arg1: memref<1x32x256xf32, #tpu.memory_space<vmem>>, %arg2: memref<32x2xf32, #tpu.memory_space<vmem>>, %arg3: memref<1x2xf32, #tpu.memory_space<vmem>>, %arg4: memref<2x32xf32, #tpu.memory_space<vmem>>, %arg5: memref<1x32xf32, #tpu.memory_space<vmem>>, %arg6: memref<1x32x256xf32, #tpu.memory_space<vmem>>, %arg7: memref<1x1x32xf32, #tpu.memory_space<vmem>>) attributes {dimension_semantics = [#tpu.dimension_semantics<parallel>], iteration_bounds = array<i64: 2>, scalar_prefetch = 0 : i64, scratch_operands = 0 : i64, tpu.core_type = #tpu.core_type<tc>, window_params = [{transform_indices = @transform_0, window_bounds = array<i64: 1, 32, 256>}, {pipeline_mode = #tpu.pipeline_mode<synchronous>, transform_indices = @transform_1, window_bounds = array<i64: 32, 2>}, {pipeline_mode = #tpu.pipeline_mode<synchronous>, transform_indices = @transform_2, window_bounds = array<i64: 1, 2>}, {pipeline_mode = #tpu.pipeline_mode<synchronous>, transform_indices = @transform_3, window_bounds = array<i64: 2, 32>}, {pipeline_mode = #tpu.pipeline_mode<synchronous>, transform_indices = @transform_4, window_bounds = array<i64: 1, 32>}, {transform_indices = @transform_5, window_bounds = array<i64: 1, 32, 256>}, {transform_indices = @transform_6, window_bounds = array<i64: 1, 1, 32>}]} {
    %c0 = arith.constant 0 : index
    %c0_0 = arith.constant 0 : index
    %c0_1 = arith.constant 0 : index
    %0 = vector.load %arg1[%c0, %c0_0, %c0_1] : memref<1x32x256xf32, #tpu.memory_space<vmem>>, vector<1x32x256xf32>
    %c0_2 = arith.constant 0 : index
    %c0_3 = arith.constant 0 : index
    %1 = vector.load %arg2[%c0_2, %c0_3] : memref<32x2xf32, #tpu.memory_space<vmem>>, vector<32x2xf32>
    %c0_4 = arith.constant 0 : index
    %c0_5 = arith.constant 0 : index
    %2 = vector.load %arg3[%c0_4, %c0_5] : memref<1x2xf32, #tpu.memory_space<vmem>>, vector<1x2xf32>
    %c0_6 = arith.constant 0 : index
    %c0_7 = arith.constant 0 : index
    %3 = vector.load %arg4[%c0_6, %c0_7] : memref<2x32xf32, #tpu.memory_space<vmem>>, vector<2x32xf32>
    %c0_8 = arith.constant 0 : index
    %c0_9 = arith.constant 0 : index
    %4 = vector.load %arg5[%c0_8, %c0_9] : memref<1x32xf32, #tpu.memory_space<vmem>>, vector<1x32xf32>
    %cst = arith.constant dense<0.000000e+00> : vector<1x32xf32>
    %5 = vector.multi_reduction <add>, %0, %cst [2] : vector<1x32x256xf32> to vector<1x32xf32>
    %cst_10 = arith.constant 3.906250e-03 : f32
    %6 = vector.broadcast %cst_10 : f32 to vector<1x32xf32>
    %7 = arith.mulf %5, %6 : vector<1x32xf32>
    %cst_11 = arith.constant dense<0xFF800000> : vector<1x32xf32>
    %8 = vector.multi_reduction <maximumf>, %0, %cst_11 [2] : vector<1x32x256xf32> to vector<1x32xf32>
    %9 = tpu.concatenate %7, %8 in 0 : vector<1x32xf32>, vector<1x32xf32> -> vector<2x32xf32>
    %cst_12 = arith.constant dense<0.000000e+00> : vector<2x2xf32>
    %10 = tpu.matmul %9, %1, %cst_12 {dimension_numbers = #tpu.dot_dimension_numbers<[1], [0], [0], [1], [0, 0, 1, 1], [], []>} : vector<2x32xf32>, vector<32x2xf32>, vector<2x2xf32> -> vector<2x2xf32>
    %11 = vector.broadcast %2 : vector<1x2xf32> to vector<2x2xf32>
    %12 = arith.addf %10, %11 : vector<2x2xf32>
    %cst_13 = arith.constant 0.000000e+00 : f32
    %13 = vector.broadcast %cst_13 : f32 to vector<2x2xf32>
    %14 = arith.maximumf %12, %13 : vector<2x2xf32>
    %cst_14 = arith.constant dense<0.000000e+00> : vector<2x32xf32>
    %15 = tpu.matmul %14, %3, %cst_14 {dimension_numbers = #tpu.dot_dimension_numbers<[1], [0], [0], [1], [0, 0, 1, 1], [], []>} : vector<2x2xf32>, vector<2x32xf32>, vector<2x32xf32> -> vector<2x32xf32>
    %16 = vector.extract_strided_slice %15 {offsets = [0, 0], sizes = [1, 32], strides = [1, 1]} : vector<2x32xf32> to vector<1x32xf32>
    %17 = vector.extract_strided_slice %15 {offsets = [1, 0], sizes = [1, 32], strides = [1, 1]} : vector<2x32xf32> to vector<1x32xf32>
    %18 = arith.addf %16, %17 : vector<1x32xf32>
    %cst_15 = arith.constant 2.000000e+00 : f32
    %19 = vector.broadcast %cst_15 : f32 to vector<1x32xf32>
    %20 = arith.mulf %19, %4 : vector<1x32xf32>
    %21 = arith.addf %18, %20 : vector<1x32xf32>
    %22 = arith.negf %21 : vector<1x32xf32>
    %23 = math.exp %22 : vector<1x32xf32>
    %cst_16 = arith.constant 1.000000e+00 : f32
    %24 = vector.broadcast %cst_16 : f32 to vector<1x32xf32>
    %25 = arith.addf %24, %23 : vector<1x32xf32>
    %26 = arith.divf %24, %25 : vector<1x32xf32>
    %27 = vector.shape_cast %26 : vector<1x32xf32> to vector<1x32x1xf32>
    %28 = vector.broadcast %27 : vector<1x32x1xf32> to vector<1x32x256xf32>
    %29 = arith.mulf %0, %28 : vector<1x32x256xf32>
    %c0_17 = arith.constant 0 : index
    %c0_18 = arith.constant 0 : index
    %c0_19 = arith.constant 0 : index
    %30 = vector.load %arg6[%c0_17, %c0_18, %c0_19] : memref<1x32x256xf32, #tpu.memory_space<vmem>>, vector<1x32x256xf32>
    tpu.vector_store %arg6[%c0_17, %c0_18, %c0_19], %29 {strides = array<i32>} : memref<1x32x256xf32, #tpu.memory_space<vmem>>, vector<1x32x256xf32>,
    %c0_20 = arith.constant 0 : index
    %c0_21 = arith.constant 0 : index
    %c0_22 = arith.constant 0 : index
    %31 = vector.load %arg7[%c0_20, %c0_21, %c0_22] : memref<1x1x32xf32, #tpu.memory_space<vmem>>, vector<1x1x32xf32>
    %32 = vector.shape_cast %31 : vector<1x1x32xf32> to vector<1x32xf32>
    %33 = vector.shape_cast %26 : vector<1x32xf32> to vector<1x1x32xf32>
    tpu.vector_store %arg7[%c0_20, %c0_21, %c0_22], %33 {strides = array<i32>} : memref<1x1x32xf32, #tpu.memory_space<vmem>>, vector<1x1x32xf32>,
    return
  }
  func.func @transform_0(%arg0: i32) -> (i32, i32, i32) {
    %c0_i32 = arith.constant 0 : i32
    %c0_i32_0 = arith.constant 0 : i32
    %c0_i32_1 = arith.constant 0 : i32
    return %arg0, %c0_i32, %c0_i32_0 : i32, i32, i32
  }
  func.func @transform_1(%arg0: i32) -> (i32, i32) {
    %c0_i32 = arith.constant 0 : i32
    %c0_i32_0 = arith.constant 0 : i32
    %c0_i32_1 = arith.constant 0 : i32
    return %c0_i32, %c0_i32_0 : i32, i32
  }
  func.func @transform_2(%arg0: i32) -> (i32, i32) {
    %c0_i32 = arith.constant 0 : i32
    %c0_i32_0 = arith.constant 0 : i32
    %c0_i32_1 = arith.constant 0 : i32
    return %c0_i32, %c0_i32_0 : i32, i32
  }
  func.func @transform_3(%arg0: i32) -> (i32, i32) {
    %c0_i32 = arith.constant 0 : i32
    %c0_i32_0 = arith.constant 0 : i32
    %c0_i32_1 = arith.constant 0 : i32
    return %c0_i32, %c0_i32_0 : i32, i32
  }
  func.func @transform_4(%arg0: i32) -> (i32, i32) {
    %c0_i32 = arith.constant 0 : i32
    %c0_i32_0 = arith.constant 0 : i32
    %c0_i32_1 = arith.constant 0 : i32
    return %c0_i32, %c0_i32_0 : i32, i32
  }
  func.func @transform_5(%arg0: i32) -> (i32, i32, i32) {
    %c0_i32 = arith.constant 0 : i32
    %c0_i32_0 = arith.constant 0 : i32
    %c0_i32_1 = arith.constant 0 : i32
    return %arg0, %c0_i32, %c0_i32_0 : i32, i32, i32
  }
  func.func @transform_6(%arg0: i32) -> (i32, i32, i32) {
    %c0_i32 = arith.constant 0 : i32
    %c0_i32_0 = arith.constant 0 : i32
    %c0_i32_1 = arith.constant 0 : i32
    return %arg0, %c0_i32, %c0_i32_0 : i32, i32, i32
  }
}

</mosaic_0001>

<bundles_post_ra>
// kernel: tpu_custom_call.1
= control target key start
LH: loop header
LB: loop body
LE: loop exit
PB: predicated region body
PF: predicated region fallthrough
CT: control target
= control target key end

     0   :  { %12 = vsyncpa [#allocation3], 0  ;;  %s1082_s0 = inlined_call_operand.hbm [shape: f32[2,32,256], index: 0, kind: input, shape index: {}]   ;;  %s1083_s1 = inlined_call_operand.vmem [shape: f32[32,2], index: 1, kind: input, shape index: {}]   ;;  %s1084_s2 = inlined_call_operand.vmem [shape: f32[1,2], index: 2, kind: input, shape index: {}]   ;;  %s1085_s3 = inlined_call_operand.vmem [shape: f32[2,32], index: 3, kind: input, shape index: {}]   ;;  %s1086_s4 = inlined_call_operand.vmem [shape: f32[1,32], index: 4, kind: input, shape index: {}]   ;;  %s1087_s5 = inlined_call_operand.hbm [shape: f32[2,32,256], index: 5, kind: output, shape index: {0}]   ;;  %s1088_s6 = inlined_call_operand.hbm [shape: f32[2,1,32], index: 6, kind: output, shape index: {1}]  }
   0x1   :  { %14 = vsyncpa [#allocation3 + $0x1], 0 }
   0x2   :  { %15 = vsyncpa [#allocation4], 0 }
   0x3   :  { %17 = vsyncpa [#allocation4 + $0x1], 0 }
   0x4   :  { %18 = vsyncpa [#allocation7], 0 }
   0x5   :  { %20 = vsyncpa [#allocation7 + $0x1], 0  ;;  %s871_s21 = smov 0   ;;  %s873_s22 = smov 0  }
   0x6   :  { %s875_s23 = smov 0   ;;  %s877_s24 = smov 0  }
   0x7 LB: > { %s892_s25 = sadd.s32 4294967295, %s830_s24   ;;  %s617_s26 = sadd.s32 4294967294, %s830_s24   ;;  %s830_s24 = sphi %s877_s24, %s1098_s24   ;;  %s826_s23 = sphi %s875_s23, %s1097_s23   ;;  %s822_s22 = sphi %s873_s22, %s1096_s22   ;;  %s818_s21 = sphi %s871_s21, %s1095_s21  }
   0x8   : > { %s896_s27 = sadd.s32 1, %s830_s24   ;;  %s33_s28 = sadd.s32 1, %s826_s23 }
   0x9   : > { %s30_s29 = ssub.s32 %s830_s24, %s896_s27  ;;  %p40_p0 = scmp.ne.s32.totalorder %s826_s23, %s822_s22 }
   0xa   : > { %p31_p1 = scmp.eq.s32.totalorder %s30_s29, 0  ;;  %p41_p2 = scmp.eq.s32.totalorder %s830_s24, 0 }
   0xb   : > { %p46_p3 = scmp.ne.s32.totalorder %s822_s22, %s818_s21  ;;  %p47_p4 = scmp.eq.s32.totalorder %s892_s25, 0 }
   0xc   : > { %s908_s30 = scalar_select %p31_p1, %s826_s23, %s33_s28  }
   0xd   : > { %p910_p5 = por %p41_p2, %p40_p0  ;;  %p914_p6 = por %p47_p4, %p46_p3 }
   0xe   : > { %p154_p7 = scmp.eq.s32.totalorder %s892_s25, 1  ;;  %p160_p8 = scmp.eq.s32.totalorder %s617_s26, 1 }
   0xf   : > { %p654_p10 = scmp.lt.s32.totalorder %s830_s24, 2  ;;  %s218_s11 = sand.u32 1, %s826_s23  }
  0x10   : > { %p921_p11 = por %p154_p7, %p40_p0  ;;  %p925_p12 = por %p160_p8, %p46_p3 }
  0x11   : > { %s635_s12 = sshll.u32 %s830_s24, 6  ;;  %s620_s13 = sshll.u32 %s218_s11, 6 }
  0x12   : > { %s227_s16 = scalar_lea.hbm %s1082_s0, %s635_s12  ;;  %s222_s18 = scalar_lea.vmem [#allocation2], %s620_s13 }
  0x13   : > { %s228_s17 = sshll.u32 %s227_s16, 4  ;;  %s230_s19 = sshll.u32 %s222_s18, 4  ;;  %s229_s17 = int_to_ptr.hbm [resolvable:$true] %s228_s17  ;;  %s231_s19 = int_to_ptr.vmem [resolvable:$true] %s230_s19 }
  0x14   : > { %p936_p13 = pnand %p654_p10, %p910_p5  ;;  %p623_p0 = scmp.ge.s32.totalorder %s830_s24, 1 }
  0x15   : > { %p238_p1 = scmp.lt.s32.totalorder %s830_s24, 3  ;;  %s219_s26 = scalar_lea.sflag [#allocation3], %s218_s11 }
  0x16   : > { %s702_s28 = sshra.s32 %s229_s17, 4  ;;  %p706_p3 = pneg %p936_p13  ;;  %s703_s28 = int_to_ptr.hbm [resolvable:$true] %s702_s28 }
  0x17   : > { %s704_s29 = scalar_lea.hbm %s703_s28, 64  ;;  %s709_s7 = scalar_lea.hbm %s1082_s0, 128 }
  0x18   : > { %p705_p2 = scmp.ne.s32.totalorder %s703_s28, %s704_s29  ;;  %p710_p5 = scmp.lt.s32.totalorder %s703_s28, %s1082_s0 }
  0x19   : > { %p711_p8 = scmp.lt.s32.totalorder %s709_s7, %s704_s29 }
  0x1a   : > { %p707_p4 = pnand %p706_p3, %p705_p2 }
  0x1b   : > { %p712_p10 = por %p711_p8, %p710_p5 }
  0x1c   : > { %p708_p7 = pneg %p707_p4 }
  0x1e   : > { %p713_p9 = pnand %p712_p10, %p708_p7 }
  0x20   : > { %716 = shalt.err (!%p713_p9)
}
  0x21   : > { %s832_s11 = smov 256   ;;  %s833_s16 = smov 16  }
  0x22   : > { %646 = dma.hbm_to_vmem [thread:$0]  (!%p936_p13), %s229_s17, 1024, %s231_s19, %s219_s26, %s832_s11, %s832_s11, %s833_s16  }
  0x23   : > { %p239_p2 = pnand %p623_p0, %p238_p1 }
  0x24   : > { %s957_s18 = sand.u32 (!%p239_p2), 1, %s822_s22  }
  0x25   : > { %242 = sbr.rel (%p239_p2) target bundleno = 599 (0x257), region = 40  ;;  %s624_s28 = sshll.u32 (!%p239_p2), %s957_s18, 6 }
  0x26   : > { %s245_s29 = scalar_lea.sflag (!%p239_p2), [#allocation3], %s957_s18  ;;  %s248_s12 = scalar_lea.vmem (!%p239_p2), [#allocation2], %s624_s28 }
  0x2a   : > { %805 = dma.done.wait (%p914_p6), %s245_s29, 1024  }
  0x2b   : > { %807 = vsyncadd (%p914_p6), %s245_s29, 4294966272  ;;  %v967_v0 = vld [vmem:[%s248_s12] sm:$0xff]  ;;  %v969_v1 = vld [vmem:[%s248_s12 + $0x8] sm:$0xff]  ;;  %v329_v23 = vlaneseq  ;;  %vm334_vm0 = vcmask 130112   ;;  %vm338_vm1 = vcmask 195712   ;;  %vm342_vm2 = vcmask 261312   ;;  %s514_s20 = scalar_lea.hbm %s1088_s6, %s892_s25 }
  0x2c   : > { %v971_v2 = vld [vmem:[%s248_s12 + $0x20] sm:$0xff]  ;;  %v313_v3 = vmax.f32 %v967_v0, %v969_v1  ;;  %v297_v4 = vadd.f32 %v969_v1, %v967_v0  ;;  %v977_v5 = vld [vmem:[%s248_s12 + $0x28] sm:$0xff]  ;;  %v981_v7 = vld [vmem:[%s248_s12 + $0x10] sm:$0xff]  ;;  %vm357_vm3 = vcmask 1040384   ;;  %vm362_vm4 = vcmask 261120   ;;  %s281_s26 = scalar_lea.vmem [#allocation6], %s957_s18 }
  0x2d   : > { %v303_v6 = vadd.f32 %v977_v5, %v971_v2  ;;  %v983_v8 = vld [vmem:[%s248_s12 + $0x18] sm:$0xff]  ;;  %v985_v9 = vld [vmem:[%s248_s12 + $0x30] sm:$0xff]  ;;  %v319_v14 = vmax.f32 %v971_v2, %v977_v5  ;;  %v291_v18 = vld [vmem:[%s1083_s1 + $0x8] sm:$0xff]  ;;  %v330_v24 = vand.u32 127, %v329_v23  ;;  %vm391_vm5 = vcmask 1041408   ;;  %s1025_s13 = sshll.u32 %s281_s26, 4  ;;  %s517_s13 = int_to_ptr.vmem [resolvable:$true] %s1025_s13 }
  0x2e   : > { %314 = vmax.xlane.f32.xlu2 %v313_v3  ;;  %298 = vadd.xlane.f32.xlu0 %v297_v4  ;;  %v987_v10 = vld [vmem:[%s248_s12 + $0x38] sm:$0xff]  ;;  %v316_v11 = vmax.f32 %v981_v7, %v983_v8  ;;  %v300_v12 = vadd.f32 %v983_v8, %v981_v7  ;;  %v292_v17 = vld [vmem:[%s1083_s1 + $0x10] sm:$0xff]  ;;  %v290_v19 = vld [vmem:[%s1083_s1] sm:$0xff]  ;;  %vm387_vm6 = vcmask 15360   ;;  %v442_v57 = vshrl.u32 %v329_v23, 7  ;;  %s518_s7 = sshll.u32 %s514_s20, 4  ;;  %s519_s7 = int_to_ptr.hbm [resolvable:$true] %s518_s7 }
  0x2f   : > { %304 = vadd.xlane.f32.xlu1 %v303_v6  ;;  %v306_v13 = vadd.f32 %v987_v10, %v985_v9  ;;  %v322_v15 = vmax.f32 %v985_v9, %v987_v10  ;;  %v293_v16 = vld [vmem:[%s1083_s1 + $0x18] sm:$0xff]  ;;  %v332_v27 = vadd.s32 4294967288, %v330_v24  ;;  %v336_v30 = vadd.s32 4294967280, %v330_v24  ;;  %v295_v52 = vld [vmem:[%s1085_s3] sm:$0x3]  ;;  %s489_s14 = scalar_lea.sflag [#allocation7], %s957_s18 }
  0x30   : > { %378 = vmatpush.msra.mxu0 %v293_v16  ;;  %v340_v35 = vadd.s32 4294967272, %v330_v24  ;;  %627 = vmatpush.msk.msra.mxu1 %vm391_vm5, %v295_v52  ;;  %v697_v53 = vld [vmem:[%s1084_s2] ss:$0 sm:$0xff]  ;;  %v455_v58 = vadd.s32 16, %v442_v57  ;;  %v449_v59 = vadd.s32 8, %v442_v57  ;;  %vm481_vm10 = vcmask 253952  }
  0x31   : > { %692 = vset.pattern.permute.xlu2 %v442_v57  ;;  %v296_v60 = vld [vmem:[%s1086_s4] sm:$0x1]  ;;  %s746_s15 = sshra.s32 %s519_s7, 4  ;;  %s752_s12 = scalar_lea.hbm %s1088_s6, 2  ;;  %s747_s15 = int_to_ptr.hbm [resolvable:$true] %s746_s15 }
  0x32   : > { %379 = vmatpush.msra.mxu0 %v292_v17  ;;  %694 = vset.pattern.permute.xlu1 %v455_v58  ;;  %v419_v63 = vmul.f32 2.0, %v296_v60  ;;  %s748_s11 = scalar_lea.hbm %s747_s15, 1  ;;  %p753_p0 = scmp.lt.s32.totalorder %s747_s15, %s1088_s6 }
  0x33   : > { %693 = vset.pattern.permute.xlu0 %v449_v59  ;;  %p749_p6 = scmp.ne.s32.totalorder %s747_s15, %s748_s11  ;;  %p754_p1 = scmp.lt.s32.totalorder %s752_s12, %s748_s11 }
  0x34   : > { %380 = vmatpush.msra.mxu0 %v291_v18 }
  0x35   : > { %p750_p9 = pnand %p749_p6, %p921_p11  ;;  %p755_p3 = por %p754_p1, %p753_p0 }
  0x36   : > { %317 = vmax.xlane.f32.xlu2 %v316_v11  ;;  %301 = vadd.xlane.f32.xlu0 %v300_v12 }
  0x37   : > { %307 = vadd.xlane.f32.xlu1 %v306_v13  ;;  %381 = vmatpush.msra.mxu0 %v290_v19  ;;  %p751_p13 = pneg %p750_p9 }
  0x39   : > { %p756_p4 = pnand %p755_p3, %p751_p13 }
  0x3e   : > { %320 = vmax.xlane.f32.xlu0 %v319_v14 }
  0x3f   : > { %323 = vmax.xlane.f32.xlu1 %v322_v15 }
  0xa1   : > { %v299_v20 = vpop.xlane.xlu0 %298  ;;  %v315_v21 = vpop.xlane.xlu2 %314 }
  0xa2   : > { %v305_v22 = vpop.xlane.xlu1 %304  ;;  %v309_v25 = vmul.f32 0.00390625, %v299_v20  ;;  %v349_v37 = vperm.slane %v315_v21, %v330_v24 }
  0xa3   : > { %v311_v31 = vmul.f32 0.00390625, %v305_v22 }
  0xa4   : > { %v331_v34 = vperm.slane %v309_v25, %v330_v24 }
  0xa5   : > { %v337_v40 = vperm.slane %v311_v31, %v336_v30 }
  0xa9   : > { %v302_v26 = vpop.xlane.xlu0 %301  ;;  %v318_v32 = vpop.xlane.xlu2 %317 }
  0xaa   : > { %v310_v28 = vmul.f32 0.00390625, %v302_v26  ;;  %v308_v29 = vpop.xlane.xlu1 %307  ;;  %v350_v38 = vperm.slane %v318_v32, %v332_v27 }
  0xab   : > { %v312_v36 = vmul.f32 0.00390625, %v308_v29 }
  0xac   : > { %v333_v33 = vperm.slane %v310_v28, %v332_v27  ;;  %v351_v46 = vsel %vm334_vm0, %v350_v38, %v349_v37 }
  0xad   : > { %v341_v41 = vperm.slane %v312_v36, %v340_v35 }
  0xae   : > { %v335_v39 = vsel %vm334_vm0, %v333_v33, %v331_v34 }
  0xaf   : > { %v339_v45 = vsel %vm338_vm1, %v337_v40, %v335_v39 }
  0xb0   : > { %v343_v49 = vsel %vm342_vm2, %v341_v41, %v339_v45 }
  0xb1   : > { %v321_v42 = vpop.xlane.xlu0 %320 }
  0xb2   : > { %v352_v43 = vperm.slane %v321_v42, %v336_v30  ;;  %v324_v44 = vpop.xlane.xlu1 %323 }
  0xb3   : > { %v354_v47 = vperm.slane %v324_v44, %v340_v35 }
  0xb4   : > { %v353_v48 = vsel %vm338_vm1, %v352_v43, %v351_v46 }
  0xb5   : > { %v355_v50 = vsel %vm342_vm2, %v354_v47, %v353_v48 }
  0xb6   : > { %v358_v51 = vsel %vm357_vm3, %v343_v49, %v355_v50 }
  0xb7   : > { %626 = vmatmul.msk.f32.vlgmr.msra.gmra.mxu0 %vm362_vm4, %v358_v51 }
 0x134   : > { %v383_v54 = vpop.f32.mrf.mxu0 }
 0x135   : > { %v384_v55 = vadd.f32 %v697_v53, %v383_v54 }
 0x137   : > { %v386_v56 = vmax.f32 %v384_v55, 0.0 }
 0x139   : > { %628 = vmatmul.msk.f32.vlgmr.msra.gmra.mxu1 %vm387_vm6, %v386_v56 }
 0x1b6   : > { %v412_v61 = vpop.f32.mrf.mxu1 }
 0x1b7   : > { %v416_v62 = vrot.slane %v412_v61, 1 }
 0x1b9   : > { %v418_v3 = vadd.f32 %v416_v62, %v412_v61 }
 0x1bb   : > { %v420_v4 = vadd.f32 %v419_v63, %v418_v3 }
 0x1bd   : > { %v629_v6 = vmul.f32 -1.442695, %v420_v4 }
 0x1bf   : > { %698 = vpow2.f32 %v629_v6 }
 0x1c5   : > { %v699_v11 = vpop.eup %698 }
 0x1c6   : > { %v424_v12 = vadd.f32 1.0, %v699_v11 }
 0x1c8   : > { %700 = vrcp.f32 %v424_v12  ;;  %v436_v16 = vand.u32 2147483648, %v424_v12  ;;  %v434_v18 = vand.u32 2147483647, %v424_v12  ;;  %vm430_vm8 = vweird.f32 %v424_v12 }
 0x1ca   : > { %v437_v20 = vor.u32 1.1754944e-38, %v436_v16  ;;  %vm435_vm11 = vcmp.eq.f32.partialorder %v434_v18, 8.507059e+37 }
 0x1ce   : > { %v701_v13 = vpop.eup %700 }
 0x1cf   : > { %v426_v14 = vmul.f32 %v701_v13, %v424_v12  ;;  %vm431_vm7 = vweird.f32 %v701_v13 }
 0x1d0   : > { %vm432_vm9 = vmor %vm430_vm8, %vm431_vm7 }
 0x1d1   : > { %v427_v15 = vsub.f32 1.0, %v426_v14 }
 0x1d3   : > { %v428_v17 = vmul.f32 %v701_v13, %v427_v15 }
 0x1d5   : > { %v429_v19 = vadd.f32 %v701_v13, %v428_v17 }
 0x1d7   : > { %v433_v21 = vsel %vm432_vm9, %v701_v13, %v429_v19 }
 0x1d8   : > { %v438_v22 = vsel %vm435_vm11, %v437_v20, %v433_v21 }
 0x1d9   : > { %v440_v23 = vperm.slane %v438_v22, 0  ;;  %482 = vst.msk [vmem:[%s281_s26] sm:$0x1] %vm481_vm10, %v438_v22 }
 0x1da   : > { %759 = shalt.err (!%p756_p4)
}
 0x1db   : > { %640 = dma.vmem_to_hbm [thread:$0]  (%p921_p11), %s517_s13, 16, %s519_s7, %s489_s14   ;;  %457 = vperm.xlu1 %694, %v440_v23   ;;  %451 = vperm.xlu0 %693, %v440_v23   ;;  %v461_v24 = vadd.s32 24, %v442_v57 }
 0x1dc   : > { %445 = vperm.xlu2 %692, %v440_v23   ;;  %s275_s19 = scalar_lea.vmem [#allocation5], %s624_s28  ;;  %s636_s20 = sshll.u32 %s892_s25, 6 }
 0x1dd   : > { %s499_s7 = scalar_lea.hbm %s1087_s5, %s636_s20  ;;  %s500_s14 = sshll.u32 %s275_s19, 4  ;;  %s501_s14 = int_to_ptr.vmem [resolvable:$true] %s500_s14 }
 0x1de   : > { %s502_s28 = sshll.u32 %s499_s7, 4  ;;  %s484_s25 = scalar_lea.sflag [#allocation4], %s957_s18  ;;  %s503_s28 = int_to_ptr.hbm [resolvable:$true] %s502_s28 }
 0x1df   : > { %s774_s15 = sshra.s32 %s503_s28, 4  ;;  %s780_s12 = scalar_lea.hbm %s1087_s5, 128  ;;  %s775_s15 = int_to_ptr.hbm [resolvable:$true] %s774_s15 }
 0x1e0   : > { %s776_s11 = scalar_lea.hbm %s775_s15, 64  ;;  %p781_p10 = scmp.lt.s32.totalorder %s775_s15, %s1087_s5 }
 0x1e1   : > { %p777_p7 = scmp.ne.s32.totalorder %s775_s15, %s776_s11  ;;  %p782_p2 = scmp.lt.s32.totalorder %s780_s12, %s776_s11 }
 0x1e3   : > { %696 = vset.pattern.permute.xlu0 %v461_v24  ;;  %p778_p5 = pnand %p777_p7, %p921_p11  ;;  %p783_p6 = por %p782_p2, %p781_p10 }
 0x1e4   : > { %695 = vset.pattern.permute.xlu2 %v461_v24 }
 0x1e5   : > { %p779_p8 = pneg %p778_p5 }
 0x1e7   : > { %p784_p9 = pnand %p783_p6, %p779_p8 }
 0x1ec   : > { %463 = vperm.xlu2 %695, %v440_v23  }
 0x236   : > { %v446_v25 = vpop.permute.xlu2 %445 }
 0x237   : > { %v465_v26 = vmul.f32 %v446_v25, %v967_v0  ;;  %v466_v27 = vmul.f32 %v446_v25, %v969_v1 }
 0x239   : > { %473 = vst [vmem:[%s275_s19] sm:$0xff] %v465_v26 }
 0x23a   : > { %474 = vst [vmem:[%s275_s19 + $0x8] sm:$0xff] %v466_v27 }
 0x246   : > { %v464_v28 = vpop.permute.xlu2 %463 }
 0x247   : > { %v471_v29 = vmul.f32 %v464_v28, %v985_v9  ;;  %v472_v30 = vmul.f32 %v464_v28, %v987_v10 }
 0x249   : > { %479 = vst [vmem:[%s275_s19 + $0x30] sm:$0xff] %v471_v29 }
 0x24a   : > { %480 = vst [vmem:[%s275_s19 + $0x38] sm:$0xff] %v472_v30 }
 0x24d   : > { %v458_v0 = vpop.permute.xlu1 %457  ;;  %v452_v1 = vpop.permute.xlu0 %451 }
 0x24e   : > { %v469_v31 = vmul.f32 %v458_v0, %v971_v2  ;;  %v470_v32 = vmul.f32 %v458_v0, %v977_v5  ;;  %v467_v9 = vmul.f32 %v452_v1, %v981_v7  ;;  %v468_v10 = vmul.f32 %v452_v1, %v983_v8 }
 0x250   : > { %477 = vst [vmem:[%s275_s19 + $0x20] sm:$0xff] %v469_v31 }
 0x251   : > { %478 = vst [vmem:[%s275_s19 + $0x28] sm:$0xff] %v470_v32 }
 0x252   : > { %475 = vst [vmem:[%s275_s19 + $0x10] sm:$0xff] %v467_v9 }
 0x253   : > { %476 = vst [vmem:[%s275_s19 + $0x18] sm:$0xff] %v468_v10 }
 0x254   : > { %787 = shalt.err (!%p784_p9)
}
 0x255   : > { %s834_s18 = smov 256   ;;  %s835_s19 = smov 16  }
 0x256   : > { %639 = dma.vmem_to_hbm [thread:$0]  (%p921_p11), %s501_s14, 1024, %s503_s28, %s484_s25, %s834_s18, %s834_s18, %s835_s19  }
 0x257 PF: > { %s530_s20 = sand.u32 1, %s818_s21   ;;  %p1094_p13 = scmp.ge.s32.totalorder %s830_s24, 2 }
 0x258   : > { %s531_s26 = scalar_lea.sflag [#allocation4], %s530_s20 }
 0x259   : > { %p648_p0 = pnand %p1094_p13, %p925_p12 }
 0x25b   : > { %p649_p1 = pneg %p648_p0 }
 0x25d   : > { %809 = dma.done.wait (%p649_p1), %s531_s26, 1024  }
 0x25e   : > { %811 = vsyncadd (%p649_p1), %s531_s26, 4294966272  ;;  %s541_s13 = scalar_lea.sflag [#allocation7], %s530_s20 }
 0x25f   : > { %813 = dma.done.wait (%p649_p1), %s541_s13, 16  }
 0x260   : > { %815 = vsyncadd (%p649_p1), %s541_s13, 4294967280  ;;  %p23_p11 = scmp.ge.s32.totalorder %s896_s27, 4   ;;  %s1095_s21 = smov %s822_s22 }
 0x261   : > { %s1096_s22 = smov %s826_s23  ;;  %s1097_s23 = smov %s908_s30 }
 0x262   : > { %s1098_s24 = smov %s896_s27  ;;  %25 = sbr.rel (!%p23_p11) target bundleno = 7 (0x7), region = 102 }
 0x267   :  { %546 = vsyncpa [#allocation3], 1 }
 0x268   :  { %548 = vsyncpa [#allocation3 + $0x1], 1 }
 0x269   :  { %549 = vsyncpa [#allocation4], 1 }
 0x26a   :  { %551 = vsyncpa [#allocation4 + $0x1], 1 }
 0x26b   :  { %552 = vsyncpa [#allocation7], 1 }
 0x26c   :  { %554 = vsyncpa [#allocation7 + $0x1], 1 }

</bundles_post_ra>
